<compile_context>
chip_gen: v5e
topology: v5e:2x2
jax: 0.10.0
libtpu: 0.0.40
codegen_flags: <defaults>
</compile_context>

<pallas_src>
import numpy as np
import jax
import jax.numpy as jnp
from jax.experimental import pallas as pl
from jax.experimental.pallas import tpu as pltpu


def _haar_dwt_kernel(x_ref, plo_ref, phi_ref, o_ref):
    """One (TB, TH) tile of the single-level Haar DWT.

    x_ref  : (TB, TH, 2*W)  row-pair packed input: [..., :W] = even original
             rows, [..., W:] = odd original rows of each pair.
    plo_ref: (W, W/2) width low-pass pairing matrix  (entries  0.5).
    phi_ref: (W, W/2) width high-pass pairing matrix (entries +/-0.5).
    o_ref  : (TB, 4, TH, W/2) bands [LL, (hi-H,lo-W), (lo-H,hi-W), HH].
    """
    tb, th, w2 = x_ref.shape
    w = w2 // 2
    wh = w // 2

    xp = x_ref[...].astype(jnp.float32)           # (TB, TH, 2W)
    xe = xp[:, :, :w]                             # even rows of each pair
    xo = xp[:, :, w:]                             # odd rows of each pair

    # Height pass on the VPU: 2-tap Haar = add / sub of the row pair.
    s_h = (xe + xo).reshape(tb * th, w)           # height low-pass  (unnormalized)
    d_h = (xe - xo).reshape(tb * th, w)           # height high-pass (unnormalized)

    # Width pass on the MXU: the (W, W/2) pairing matrices regroup adjacent
    # lanes for free and carry the single exact 0.5 normalization.
    plo = plo_ref[...]
    phi = phi_ref[...]
    ll = jnp.dot(s_h, plo, preferred_element_type=jnp.float32)   # LL
    lh = jnp.dot(d_h, plo, preferred_element_type=jnp.float32)   # hi-H, lo-W
    hl = jnp.dot(s_h, phi, preferred_element_type=jnp.float32)   # lo-H, hi-W
    hh = jnp.dot(d_h, phi, preferred_element_type=jnp.float32)   # HH

    dt = o_ref.dtype
    o_ref[:, 0] = ll.reshape(tb, th, wh).astype(dt)
    o_ref[:, 1] = lh.reshape(tb, th, wh).astype(dt)
    o_ref[:, 2] = hl.reshape(tb, th, wh).astype(dt)
    o_ref[:, 3] = hh.reshape(tb, th, wh).astype(dt)


def _haar_width_matrices(w):
    """Haar width pairing matrices with the full 0.5 normalization folded in.

    plo[2c, c] = plo[2c+1, c] = 0.5 ;  phi[2c, c] = 0.5, phi[2c+1, c] = -0.5
    (matches pytorch_wavelets prep_filt_afb1d: filters reversed, conv = xcorr).
    """
    wh = w // 2
    eye = np.eye(wh, dtype=np.float32)
    plo = np.kron(eye, np.array([[0.5], [0.5]], np.float32))    # (W, W/2)
    phi = np.kron(eye, np.array([[0.5], [-0.5]], np.float32))   # (W, W/2)
    return jnp.asarray(plo), jnp.asarray(phi)


def _pick_row_tile(hh):
    """Largest multiple-of-8 divisor of hh that is <= 256, else hh (full)."""
    if hh <= 256:
        return hh
    for t in range(256, 7, -8):
        if hh % t == 0:
            return t
    return hh


def _pick_batch_tile(b, th, hh, w, itemsize):
    """Batch several small images per grid step to amortize per-step overhead."""
    if th != hh:
        return 1
    best = 1
    for d in range(1, b + 1):
        if d * th > 256 or d * th * 2 * w * itemsize > (4 << 20):
            break
        if b % d == 0:
            best = d
    return best


@jax.jit
def wavelets_transform(x):
    """Equivalent of WaveletsTransform.forward: x (B, H, W) -> (B, 4, H//2, W//2)."""
    B, H, W = x.shape
    assert H % 2 == 0 and W % 2 == 0, "haar/zero single-level DWT expects even H, W"
    Hh, Wh = H // 2, W // 2

    # Pack each row pair side by side along the lane dim (free, contiguous):
    # xp[b, r, :W] = x[b, 2r, :], xp[b, r, W:] = x[b, 2r+1, :].
    xp = x.reshape(B, Hh, 2 * W)

    plo, phi = _haar_width_matrices(W)

    itemsize = x.dtype.itemsize
    th = _pick_row_tile(Hh)
    tb = _pick_batch_tile(B, th, Hh, W, itemsize)
    grid = (B // tb, Hh // th)

    # VMEM budget: double-buffered in/out blocks + (resident) weights + headroom.
    in_blk = tb * th * 2 * W * itemsize
    out_blk = tb * 4 * th * Wh * itemsize
    wt = 2 * W * Wh * 4
    est = 2 * (in_blk + out_blk) + 2 * wt + (4 << 20)
    vmem_limit = int(min(max(est, 32 << 20), 64 << 20))

    return pl.pallas_call(
        _haar_dwt_kernel,
        out_shape=jax.ShapeDtypeStruct((B, 4, Hh, Wh), x.dtype),
        grid_spec=pltpu.PrefetchScalarGridSpec(
            num_scalar_prefetch=0,
            grid=grid,
            in_specs=[
                pl.BlockSpec((tb, th, 2 * W), lambda b, t: (b, t, 0)),
                pl.BlockSpec((W, Wh), lambda b, t: (0, 0)),
                pl.BlockSpec((W, Wh), lambda b, t: (0, 0)),
            ],
            out_specs=pl.BlockSpec((tb, 4, th, Wh), lambda b, t: (b, 0, t, 0)),
        ),
        compiler_params=pltpu.CompilerParams(
            dimension_semantics=("parallel", "parallel"),
            vmem_limit_bytes=vmem_limit,
        ),
    )(xp, plo, phi)


if __name__ == "__main__":
    key = jax.random.PRNGKey(0)
    B, H, W = 2, 16, 16
    x = jax.random.normal(key, (B, H, W), dtype=jnp.float32)

    out = jax.block_until_ready(wavelets_transform(x))

    # Pure-numpy reference of DWTForward('haar','zero',J=1) + cat + squeeze.
    xn = np.asarray(x)
    a = xn[:, 0::2, 0::2]
    b = xn[:, 0::2, 1::2]
    c = xn[:, 1::2, 0::2]
    d = xn[:, 1::2, 1::2]
    ref = np.stack([(a + b + c + d) / 2.0,   # LL
                    (a + b - c - d) / 2.0,   # hi-H, lo-W
                    (a - b + c - d) / 2.0,   # lo-H, hi-W
                    (a - b - c + d) / 2.0],  # HH
                   axis=1)

    assert out.shape == (B, 4, H // 2, W // 2), out.shape
    np.testing.assert_allclose(np.asarray(out), ref, rtol=1e-5, atol=1e-5)
    print("KERNEL_OK")
</pallas_src>

<mosaic_0001>
module attributes {stable_mosaic.version = 11 : i64} {
  func.func @_haar_dwt_kernel(%arg0: i32, %arg1: i32, %arg2: memref<2x8x32xf32, #tpu.memory_space<vmem>>, %arg3: memref<16x8xf32, #tpu.memory_space<vmem>>, %arg4: memref<16x8xf32, #tpu.memory_space<vmem>>, %arg5: memref<2x4x8x8xf32, #tpu.memory_space<vmem>>) attributes {dimension_semantics = [#tpu.dimension_semantics<parallel>, #tpu.dimension_semantics<parallel>], iteration_bounds = array<i64: 1, 1>, scalar_prefetch = 0 : i64, scratch_operands = 0 : i64, tpu.core_type = #tpu.core_type<tc>, window_params = [{transform_indices = @transform_0, window_bounds = array<i64: 2, 8, 32>}, {pipeline_mode = #tpu.pipeline_mode<synchronous>, transform_indices = @transform_1, window_bounds = array<i64: 16, 8>}, {pipeline_mode = #tpu.pipeline_mode<synchronous>, transform_indices = @transform_2, window_bounds = array<i64: 16, 8>}, {transform_indices = @transform_3, window_bounds = array<i64: 2, 4, 8, 8>}]} {
    %c0 = arith.constant 0 : index
    %c0_0 = arith.constant 0 : index
    %c0_1 = arith.constant 0 : index
    %0 = vector.load %arg2[%c0, %c0_0, %c0_1] : memref<2x8x32xf32, #tpu.memory_space<vmem>>, vector<2x8x32xf32>
    %1 = vector.extract_strided_slice %0 {offsets = [0, 0, 0], sizes = [2, 8, 16], strides = [1, 1, 1]} : vector<2x8x32xf32> to vector<2x8x16xf32>
    %2 = vector.extract_strided_slice %0 {offsets = [0, 0, 16], sizes = [2, 8, 16], strides = [1, 1, 1]} : vector<2x8x32xf32> to vector<2x8x16xf32>
    %3 = arith.addf %1, %2 : vector<2x8x16xf32>
    %4 = vector.shape_cast %3 : vector<2x8x16xf32> to vector<16x16xf32>
    %5 = arith.subf %1, %2 : vector<2x8x16xf32>
    %6 = vector.shape_cast %5 : vector<2x8x16xf32> to vector<16x16xf32>
    %c0_2 = arith.constant 0 : index
    %c0_3 = arith.constant 0 : index
    %7 = vector.load %arg3[%c0_2, %c0_3] : memref<16x8xf32, #tpu.memory_space<vmem>>, vector<16x8xf32>
    %c0_4 = arith.constant 0 : index
    %c0_5 = arith.constant 0 : index
    %8 = vector.load %arg4[%c0_4, %c0_5] : memref<16x8xf32, #tpu.memory_space<vmem>>, vector<16x8xf32>
    %cst = arith.constant dense<0.000000e+00> : vector<16x8xf32>
    %9 = tpu.matmul %4, %7, %cst {dimension_numbers = #tpu.dot_dimension_numbers<[1], [0], [0], [1], [0, 0, 1, 1], [], []>} : vector<16x16xf32>, vector<16x8xf32>, vector<16x8xf32> -> vector<16x8xf32>
    %cst_6 = arith.constant dense<0.000000e+00> : vector<16x8xf32>
    %10 = tpu.matmul %6, %7, %cst_6 {dimension_numbers = #tpu.dot_dimension_numbers<[1], [0], [0], [1], [0, 0, 1, 1], [], []>} : vector<16x16xf32>, vector<16x8xf32>, vector<16x8xf32> -> vector<16x8xf32>
    %cst_7 = arith.constant dense<0.000000e+00> : vector<16x8xf32>
    %11 = tpu.matmul %4, %8, %cst_7 {dimension_numbers = #tpu.dot_dimension_numbers<[1], [0], [0], [1], [0, 0, 1, 1], [], []>} : vector<16x16xf32>, vector<16x8xf32>, vector<16x8xf32> -> vector<16x8xf32>
    %cst_8 = arith.constant dense<0.000000e+00> : vector<16x8xf32>
    %12 = tpu.matmul %6, %8, %cst_8 {dimension_numbers = #tpu.dot_dimension_numbers<[1], [0], [0], [1], [0, 0, 1, 1], [], []>} : vector<16x16xf32>, vector<16x8xf32>, vector<16x8xf32> -> vector<16x8xf32>
    %13 = vector.shape_cast %9 : vector<16x8xf32> to vector<2x8x8xf32>
    %c0_9 = arith.constant 0 : index
    %c0_10 = arith.constant 0 : index
    %c0_11 = arith.constant 0 : index
    %c0_12 = arith.constant 0 : index
    %14 = vector.load %arg5[%c0_9, %c0_10, %c0_11, %c0_12] : memref<2x4x8x8xf32, #tpu.memory_space<vmem>>, vector<2x1x8x8xf32>
    %15 = vector.shape_cast %14 : vector<2x1x8x8xf32> to vector<2x8x8xf32>
    %16 = vector.shape_cast %13 : vector<2x8x8xf32> to vector<2x1x8x8xf32>
    tpu.vector_store %arg5[%c0_9, %c0_10, %c0_11, %c0_12], %16 {strides = array<i32>} : memref<2x4x8x8xf32, #tpu.memory_space<vmem>>, vector<2x1x8x8xf32>,
    %17 = vector.shape_cast %10 : vector<16x8xf32> to vector<2x8x8xf32>
    %c0_13 = arith.constant 0 : index
    %c1 = arith.constant 1 : index
    %c0_14 = arith.constant 0 : index
    %c0_15 = arith.constant 0 : index
    %18 = vector.load %arg5[%c0_13, %c1, %c0_14, %c0_15] : memref<2x4x8x8xf32, #tpu.memory_space<vmem>>, vector<2x1x8x8xf32>
    %19 = vector.shape_cast %18 : vector<2x1x8x8xf32> to vector<2x8x8xf32>
    %20 = vector.shape_cast %17 : vector<2x8x8xf32> to vector<2x1x8x8xf32>
    tpu.vector_store %arg5[%c0_13, %c1, %c0_14, %c0_15], %20 {strides = array<i32>} : memref<2x4x8x8xf32, #tpu.memory_space<vmem>>, vector<2x1x8x8xf32>,
    %21 = vector.shape_cast %11 : vector<16x8xf32> to vector<2x8x8xf32>
    %c0_16 = arith.constant 0 : index
    %c2 = arith.constant 2 : index
    %c0_17 = arith.constant 0 : index
    %c0_18 = arith.constant 0 : index
    %22 = vector.load %arg5[%c0_16, %c2, %c0_17, %c0_18] : memref<2x4x8x8xf32, #tpu.memory_space<vmem>>, vector<2x1x8x8xf32>
    %23 = vector.shape_cast %22 : vector<2x1x8x8xf32> to vector<2x8x8xf32>
    %24 = vector.shape_cast %21 : vector<2x8x8xf32> to vector<2x1x8x8xf32>
    tpu.vector_store %arg5[%c0_16, %c2, %c0_17, %c0_18], %24 {strides = array<i32>} : memref<2x4x8x8xf32, #tpu.memory_space<vmem>>, vector<2x1x8x8xf32>,
    %25 = vector.shape_cast %12 : vector<16x8xf32> to vector<2x8x8xf32>
    %c0_19 = arith.constant 0 : index
    %c3 = arith.constant 3 : index
    %c0_20 = arith.constant 0 : index
    %c0_21 = arith.constant 0 : index
    %26 = vector.load %arg5[%c0_19, %c3, %c0_20, %c0_21] : memref<2x4x8x8xf32, #tpu.memory_space<vmem>>, vector<2x1x8x8xf32>
    %27 = vector.shape_cast %26 : vector<2x1x8x8xf32> to vector<2x8x8xf32>
    %28 = vector.shape_cast %25 : vector<2x8x8xf32> to vector<2x1x8x8xf32>
    tpu.vector_store %arg5[%c0_19, %c3, %c0_20, %c0_21], %28 {strides = array<i32>} : memref<2x4x8x8xf32, #tpu.memory_space<vmem>>, vector<2x1x8x8xf32>,
    return
  }
  func.func @transform_0(%arg0: i32, %arg1: i32) -> (i32, i32, i32) {
    %c0_i32 = arith.constant 0 : i32
    %c0_i32_0 = arith.constant 0 : i32
    return %arg0, %arg1, %c0_i32 : i32, i32, i32
  }
  func.func @transform_1(%arg0: i32, %arg1: i32) -> (i32, i32) {
    %c0_i32 = arith.constant 0 : i32
    %c0_i32_0 = arith.constant 0 : i32
    %c0_i32_1 = arith.constant 0 : i32
    return %c0_i32, %c0_i32_0 : i32, i32
  }
  func.func @transform_2(%arg0: i32, %arg1: i32) -> (i32, i32) {
    %c0_i32 = arith.constant 0 : i32
    %c0_i32_0 = arith.constant 0 : i32
    %c0_i32_1 = arith.constant 0 : i32
    return %c0_i32, %c0_i32_0 : i32, i32
  }
  func.func @transform_3(%arg0: i32, %arg1: i32) -> (i32, i32, i32, i32) {
    %c0_i32 = arith.constant 0 : i32
    %c0_i32_0 = arith.constant 0 : i32
    %c0_i32_1 = arith.constant 0 : i32
    return %arg0, %c0_i32, %arg1, %c0_i32_0 : i32, i32, i32, i32
  }
}

</mosaic_0001>

<bundles_post_ra>
// kernel: wavelets_transform.1
= control target key start
LH: loop header
LB: loop body
LE: loop exit
PB: predicated region body
PF: predicated region fallthrough
CT: control target
= control target key end

     0   :  { %s206_s16 = smov 112   ;;  %s259_s0 = inlined_call_operand.vmem [shape: f32[2,8,32], index: 0, kind: input, shape index: {}]   ;;  %s260_s1 = inlined_call_operand.vmem [shape: f32[16,8], index: 1, kind: input, shape index: {}]   ;;  %s261_s2 = inlined_call_operand.vmem [shape: f32[16,8], index: 2, kind: input, shape index: {}]   ;;  %s262_s3 = inlined_call_operand.hbm [shape: f32[2,4,8,8], index: 3, kind: output, shape index: {}]  }
   0x1   :  { %v15_v0 = vld [vmem:[%s259_s0] sm:$0xff]  ;;  %v30_v1 = vld [vmem:[%s260_s1 + $0x8] sm:$0xff] }
   0x2   :  { %19 = vrot.lane.b32.xlu0 %v15_v0, %s206_s16  ;;  %54 = vmatpush.msra.mxu0 %v30_v1  ;;  %v32_v2 = vld [vmem:[%s261_s2 + $0x8] sm:$0xff] }
   0x3   :  { %8 = vsyncpa [#allocation3], 0  ;;  %83 = vmatpush.msra.mxu1 %v30_v1  ;;  %106 = vmatpush.msra.mxu2 %v32_v2  ;;  %v16_v3 = vld [vmem:[%s259_s0 + $0x8] sm:$0xff]  ;;  %v29_v4 = vld [vmem:[%s260_s1] sm:$0xff]  ;;  %vm33_vm0 = vcmask 130048   ;;  %vm138_vm1 = vcmask 64512  }
   0x4   :  { %129 = vmatpush.msra.mxu3 %v32_v2  ;;  %v31_v5 = vld [vmem:[%s261_s2] sm:$0xff]  ;;  %55 = vmatpush.msra.mxu0 %v29_v4  ;;  %s207_s0 = smov [#allocation2]   ;;  %s156_s26 = sshll.u32 %s262_s3, 4  ;;  %s157_s26 = int_to_ptr.hbm [resolvable:$true] %s156_s26 }
   0x5   :  { %84 = vmatpush.msra.mxu1 %v29_v4  ;;  %107 = vmatpush.msra.mxu2 %v31_v5  ;;  %s154_s1 = sshll.u32 %s207_s0, 4  ;;  %s208_s27 = smov 128   ;;  %s155_s1 = int_to_ptr.vmem [resolvable:$true] %s154_s1 }
   0x6   :  { %130 = vmatpush.msra.mxu3 %v31_v5  ;;  %s209_s28 = smov 8  }
   0xa   :  { %21 = vrot.lane.b32.xlu0 %v16_v3, %s206_s16 }
  0x74   :  { %v20_v6 = vpop.permute.xlu0 %19 }
  0x75   :  { %v25_v7 = vadd.f32 %v20_v6, %v15_v0  ;;  %v27_v8 = vsub.f32 %v15_v0, %v20_v6 }
  0x77   :  { %168 = vmatmul.msk.f32.vlgmr.msra.gmra.mxu0 %vm33_vm0, %v25_v7  ;;  %170 = vmatmul.msk.f32.vlgmr.msra.gmra.mxu1 %vm33_vm0, %v27_v8 }
  0x78   :  { %172 = vmatmul.msk.f32.vlgmr.msra.gmra.mxu2 %vm33_vm0, %v25_v7  ;;  %174 = vmatmul.msk.f32.vlgmr.msra.gmra.mxu3 %vm33_vm0, %v27_v8 }
  0x7c   :  { %v22_v9 = vpop.permute.xlu0 %21 }
  0x7d   :  { %v26_v10 = vadd.f32 %v22_v9, %v16_v3  ;;  %v28_v11 = vsub.f32 %v16_v3, %v22_v9 }
  0x7f   :  { %169 = vmatmul.msk.f32.gmra.mxu0 %vm33_vm0, %v26_v10  ;;  %171 = vmatmul.msk.f32.gmra.mxu1 %vm33_vm0, %v28_v11 }
  0x80   :  { %173 = vmatmul.msk.f32.gmra.mxu2 %vm33_vm0, %v26_v10  ;;  %175 = vmatmul.msk.f32.gmra.mxu3 %vm33_vm0, %v28_v11 }
  0xf4   :  { %v57_v12 = vpop.f32.mrf.mxu0  ;;  %v86_v13 = vpop.f32.mrf.mxu1 }
  0xf5   :  { %139 = vst.msk [vmem:[#allocation2] sm:$0xff] %vm138_vm1, %v57_v12 }
  0xf6   :  { %142 = vst.msk [vmem:[#allocation2 + $0x8] sm:$0xff] %vm138_vm1, %v86_v13 }
  0xfb   :  { %v109_v14 = vpop.f32.mrf.mxu2  ;;  %v132_v15 = vpop.f32.mrf.mxu3 }
  0xfc   :  { %145 = vst.msk [vmem:[#allocation2 + $0x10] sm:$0xff] %vm138_vm1, %v109_v14  ;;  %v60_v16 = vpop.f32.mrf.mxu0  ;;  %v89_v17 = vpop.f32.mrf.mxu1 }
  0xfd   :  { %148 = vst.msk [vmem:[#allocation2 + $0x18] sm:$0xff] %vm138_vm1, %v132_v15 }
  0xfe   :  { %140 = vst.msk [vmem:[#allocation2 + $0x20] sm:$0xff] %vm138_vm1, %v60_v16 }
  0xff   :  { %143 = vst.msk [vmem:[#allocation2 + $0x28] sm:$0xff] %vm138_vm1, %v89_v17 }
 0x103   :  { %v112_v18 = vpop.f32.mrf.mxu2  ;;  %v135_v19 = vpop.f32.mrf.mxu3 }
 0x104   :  { %146 = vst.msk [vmem:[#allocation2 + $0x30] sm:$0xff] %vm138_vm1, %v112_v18 }
 0x105   :  { %149 = vst.msk [vmem:[#allocation2 + $0x38] sm:$0xff] %vm138_vm1, %v135_v19 }
 0x106   :  { %162 = dma.vmem_to_hbm [thread:$0]  %s155_s1, 1024, %s157_s26, [#allocation3], %s208_s27, %s208_s27, %s209_s28  }
 0x107   :  { %204 = dma.done.wait [#allocation3], 1024  }
 0x108   :  { %205 = vsyncadd [#allocation3], 4294966272 }
 0x109   :  { %167 = vsyncpa [#allocation3], 1 }

</bundles_post_ra>
